<compile_context>
chip_gen: v6e
topology: v6e:2x2x1
jax: 0.10.0
libtpu: 0.0.40
codegen_flags: <defaults>
</compile_context>

<pallas_src>
import math

import jax
import jax.numpy as jnp
from jax.experimental import pallas as pl
from jax.experimental.pallas import tpu as pltpu

_MIB = 1024 * 1024


# ---------------------------------------------------------------------------
# Deterministic "parameter" setup (same closed-form as the PyTorch __init__).
# ---------------------------------------------------------------------------
def get_slopes(n: int):
    def get_slopes_power_of_2(n: int):
        start = 2 ** (-(2 ** (-(math.log2(n) - 3))))
        return [start * 2 ** i for i in range(n)]

    if math.log2(n).is_integer():
        return get_slopes_power_of_2(n)
    closest_power_of_2 = 2 ** math.floor(math.log2(n))
    slopes_power_2 = get_slopes_power_of_2(closest_power_of_2)
    slopes_remaining = get_slopes_power_of_2(2 * closest_power_of_2)[0::2][
        : n - closest_power_of_2
    ]
    return slopes_power_2 + slopes_remaining


# ---------------------------------------------------------------------------
# Pallas kernel: one (1, TQ, TK) tile of one head's bias per grid step.
# ---------------------------------------------------------------------------
def _alibi_kernel(slopes_ref, o_ref):
    # slopes_ref: (H,) float32 in SMEM; o_ref: (1, TQ, TK) block in VMEM.
    qi = pl.program_id(0)
    h = pl.program_id(1)
    kj = pl.program_id(2)
    slope = slopes_ref[h]

    _, TQ, TK = o_ref.shape
    q_off = qi * TQ  # first query (row) index covered by this tile
    k_off = kj * TK  # first key (col) index covered by this tile

    # Tile classification w.r.t. the diagonal (conservative for partial
    # boundary tiles — they simply fall into the masked where() branch).
    above_diag = k_off > q_off + (TQ - 1)            # every j > i  -> zeros
    below_diag = k_off + (TK - 1) <= q_off           # every j <= i -> no mask

    @pl.when(above_diag)
    def _():
        o_ref[...] = jnp.zeros_like(o_ref)

    @pl.when(jnp.logical_not(above_diag))
    def _():
        # Low-rank iotas: (1,1,TK) col and (1,TQ,1) row; broadcast on use.
        # int32 -> float32 is exact for any realistic seq_len (< 2^24).
        col = jax.lax.broadcasted_iota(jnp.int32, (1, 1, TK), 2) + k_off
        vals = ((-slope) * col.astype(jnp.float32)).astype(o_ref.dtype)

        @pl.when(below_diag)
        def _():
            o_ref[...] = jnp.broadcast_to(vals, o_ref.shape)

        @pl.when(jnp.logical_not(below_diag))
        def _():
            row = jax.lax.broadcasted_iota(jnp.int32, (1, TQ, 1), 1) + q_off
            o_ref[...] = jnp.where(col <= row, vals,
                                   jnp.zeros((), o_ref.dtype))


def alibi_bias(slopes: jnp.ndarray, seq_len: int, *,
               tq: int = None, tk: int = None,
               out_dtype=jnp.float32,
               tile_budget_bytes: int = 8 * _MIB) -> jnp.ndarray:
    """Compute the exact (H, seq_len, seq_len) ALiBi bias with a tiled Pallas kernel."""
    num_heads = int(slopes.shape[0])
    seq_len = int(seq_len)
    itemsize = jnp.dtype(out_dtype).itemsize
    # Sublane multiple for the second-minor block dim: 8 (f32) / 16 (bf16) / 32 (i8).
    sub = max(8, 32 // itemsize)

    # --- tk: prefer the full 128-aligned key width (contiguous row writeback,
    #         kj grid axis collapses), capped so >= `sub` rows fit the budget.
    if tk is None:
        if seq_len <= 128:
            tk = seq_len                       # full last dim (tiny case)
        else:
            tk_full = (seq_len // 128) * 128   # widest 128-multiple <= seq_len
            max_tk = max(128, (tile_budget_bytes // (sub * itemsize)) // 128 * 128)
            tk = min(tk_full, max_tk)

    # --- tq: as many rows as fit the tile budget.
    if tq is None:
        if seq_len <= sub:
            tq = seq_len                       # full second-minor dim (tiny case)
        else:
            rows = max(sub, (tile_budget_bytes // (tk * itemsize)) // sub * sub)
            tq = min((seq_len // sub) * sub, rows)

    tile_bytes = tq * tk * itemsize
    # Explicit scoped-VMEM limit: covers double-buffered output tiles on every
    # generation (v5e default is only 16 MiB; physical VMEM is far larger).
    vmem_limit = int(min(64 * _MIB, max(32 * _MIB, 2 * tile_bytes + 4 * _MIB)))

    grid = (pl.cdiv(seq_len, tq), num_heads, pl.cdiv(seq_len, tk))

    # NOTE: out_specs could take pipeline_mode=pl.Buffered(3) on v7x; measured
    # as a low single-digit % lever, so left at the default of 2 buffers here.
    return pl.pallas_call(
        _alibi_kernel,
        out_shape=jax.ShapeDtypeStruct((num_heads, seq_len, seq_len), out_dtype),
        grid_spec=pltpu.PrefetchScalarGridSpec(
            num_scalar_prefetch=0,
            grid=grid,
            in_specs=[pl.BlockSpec(memory_space=pltpu.MemorySpace.SMEM)],
            out_specs=pl.BlockSpec((1, tq, tk), lambda qi, h, kj: (h, qi, kj)),
        ),
        compiler_params=pltpu.CompilerParams(
            dimension_semantics=("parallel", "parallel", "parallel"),
            vmem_limit_bytes=vmem_limit),
        cost_estimate=pl.CostEstimate(
            flops=0,
            transcendentals=0,
            bytes_accessed=num_heads * seq_len * seq_len * itemsize),
    )(slopes.astype(jnp.float32))


class ALiBiPallas:
    """Mirrors the PyTorch ALiBi module's forward pass."""

    def __init__(self, num_heads: int, max_seq_length: int = 2048):
        self.num_heads = num_heads
        self.max_seq_length = max_seq_length
        self.slopes = jnp.asarray(get_slopes(num_heads), dtype=jnp.float32)

    def __call__(self, x: jnp.ndarray, seq_len=None) -> jnp.ndarray:
        if seq_len is None:
            seq_len = x.shape[1]
        # Both the cached branch (seq_len <= max_seq_length) and the recompute
        # branch of the PyTorch module produce the identical closed-form bias,
        # so the kernel computes it directly from seq_len in either case.
        # TODO(synk): the order-of-magnitude win is to fuse this bias into the
        # attention kernel (regenerate the (TQ,TK) tile in-register and add to
        # the logits) instead of materializing H*S*S floats in HBM.
        return alibi_bias(self.slopes, int(seq_len))


# ---------------------------------------------------------------------------
# Pure-JAX reference (mirrors the PyTorch buffer construction).
# ---------------------------------------------------------------------------
def alibi_ref(slopes: jnp.ndarray, seq_len: int) -> jnp.ndarray:
    pos = jnp.arange(seq_len)
    bias = jnp.tril(jnp.broadcast_to(pos[None, :], (seq_len, seq_len)))
    return (-bias.astype(jnp.float32)) * slopes[:, None, None]


if __name__ == "__main__":
    num_heads = 4
    batch, seq, hidden = 2, 8, 32

    key = jax.random.PRNGKey(0)
    x = jax.random.normal(key, (batch, seq, hidden), dtype=jnp.float32)

    module = ALiBiPallas(num_heads=num_heads, max_seq_length=2048)

    # Small-shape forward, exactly as the module implies (seq from x.shape[1]).
    out = jax.block_until_ready(module(x))  # (num_heads, seq, seq)
    ref = alibi_ref(module.slopes, seq)
    assert out.shape == (num_heads, seq, seq), out.shape
    assert out.dtype == jnp.float32, out.dtype
    assert jnp.allclose(out, ref, atol=0.0, rtol=0.0), "mismatch vs reference (small)"

    # Multi-tile check: exercises above-/below-/on-diagonal tile branches and
    # tile-offset iota correctness with an explicit small tiling.
    seq2 = 512
    out2 = jax.block_until_ready(
        alibi_bias(module.slopes, seq2, tq=128, tk=128))
    ref2 = alibi_ref(module.slopes, seq2)
    assert out2.shape == (num_heads, seq2, seq2), out2.shape
    assert jnp.allclose(out2, ref2, atol=0.0, rtol=0.0), "mismatch vs reference (tiled)"

    # Non-tile-aligned check: exact out_shape, boundary tiles take masked
    # stores (no padded output + slice pass).
    seq3 = 200
    out3 = jax.block_until_ready(alibi_bias(module.slopes, seq3))
    ref3 = alibi_ref(module.slopes, seq3)
    assert out3.shape == (num_heads, seq3, seq3), out3.shape
    assert jnp.allclose(out3, ref3, atol=0.0, rtol=0.0), "mismatch vs reference (unaligned)"

    print("KERNEL_OK")
</pallas_src>

<mosaic_0001>
module attributes {stable_mosaic.version = 11 : i64} {
  func.func @_alibi_kernel(%arg0: i32, %arg1: i32, %arg2: i32, %arg3: memref<4xf32, #tpu.memory_space<smem>>, %arg4: memref<1x8x8xf32, #tpu.memory_space<vmem>>) attributes {dimension_semantics = [#tpu.dimension_semantics<parallel>, #tpu.dimension_semantics<parallel>, #tpu.dimension_semantics<parallel>], iteration_bounds = array<i64: 1, 4, 1>, scalar_prefetch = 0 : i64, scratch_operands = 0 : i64, tpu.core_type = #tpu.core_type<tc>, window_params = [{transform_indices = @transform_0, window_bounds = array<i64: 4>}, {transform_indices = @transform_1, window_bounds = array<i64: 1, 8, 8>}]} {
    %0 = arith.index_cast %arg1 : i32 to index
    %1 = memref.load %arg3[%0] : memref<4xf32, #tpu.memory_space<smem>>
    %c8_i32 = arith.constant 8 : i32
    %2 = arith.muli %arg0, %c8_i32 : i32
    %c8_i32_0 = arith.constant 8 : i32
    %3 = arith.muli %arg2, %c8_i32_0 : i32
    %c7_i32 = arith.constant 7 : i32
    %4 = arith.addi %2, %c7_i32 : i32
    %5 = arith.cmpi sgt, %3, %4 : i32
    %c7_i32_1 = arith.constant 7 : i32
    %6 = arith.addi %3, %c7_i32_1 : i32
    %7 = arith.cmpi sle, %6, %2 : i32
    %8 = arith.extui %5 : i1 to i32
    %c0_i32 = arith.constant 0 : i32
    %9 = arith.cmpi ne, %8, %c0_i32 : i32
    scf.if %9 {
      %cst = arith.constant 0.000000e+00 : f32
      %13 = vector.broadcast %cst : f32 to vector<1x8x8xf32>
      %c0 = arith.constant 0 : index
      %c0_3 = arith.constant 0 : index
      %c0_4 = arith.constant 0 : index
      %14 = vector.load %arg4[%c0, %c0_3, %c0_4] : memref<1x8x8xf32, #tpu.memory_space<vmem>>, vector<1x8x8xf32>
      tpu.vector_store %arg4[%c0, %c0_3, %c0_4], %13 {strides = array<i32>} : memref<1x8x8xf32, #tpu.memory_space<vmem>>, vector<1x8x8xf32>,
    } else {
    }
    %true = arith.constant true
    %10 = arith.xori %5, %true : i1
    %11 = arith.extui %10 : i1 to i32
    %c0_i32_2 = arith.constant 0 : i32
    %12 = arith.cmpi ne, %11, %c0_i32_2 : i32
    scf.if %12 {
      %13 = tpu.iota {dimensions = array<i32: 2>} : vector<1x1x8xi32>
      %14 = vector.broadcast %3 : i32 to vector<1x1x8xi32>
      %15 = arith.addi %13, %14 : vector<1x1x8xi32>
      %cst = arith.constant 0.000000e+00 : f32
      %16 = arith.subf %cst, %1 : f32
      %17 = arith.sitofp %15 : vector<1x1x8xi32> to vector<1x1x8xf32>
      %18 = vector.broadcast %16 : f32 to vector<1x1x8xf32>
      %19 = arith.mulf %18, %17 : vector<1x1x8xf32>
      %20 = arith.extui %7 : i1 to i32
      %c0_i32_3 = arith.constant 0 : i32
      %21 = arith.cmpi ne, %20, %c0_i32_3 : i32
      scf.if %21 {
        %25 = vector.shape_cast %19 : vector<1x1x8xf32> to vector<1x1x8xf32>
        %26 = vector.broadcast %25 : vector<1x1x8xf32> to vector<1x8x8xf32>
        %c0 = arith.constant 0 : index
        %c0_6 = arith.constant 0 : index
        %c0_7 = arith.constant 0 : index
        %27 = vector.load %arg4[%c0, %c0_6, %c0_7] : memref<1x8x8xf32, #tpu.memory_space<vmem>>, vector<1x8x8xf32>
        tpu.vector_store %arg4[%c0, %c0_6, %c0_7], %26 {strides = array<i32>} : memref<1x8x8xf32, #tpu.memory_space<vmem>>, vector<1x8x8xf32>,
      } else {
      }
      %true_4 = arith.constant true
      %22 = arith.xori %7, %true_4 : i1
      %23 = arith.extui %22 : i1 to i32
      %c0_i32_5 = arith.constant 0 : i32
      %24 = arith.cmpi ne, %23, %c0_i32_5 : i32
      scf.if %24 {
        %25 = tpu.iota {dimensions = array<i32: 1>} : vector<1x8x1xi32>
        %26 = vector.broadcast %2 : i32 to vector<1x8x1xi32>
        %27 = arith.addi %25, %26 : vector<1x8x1xi32>
        %28 = vector.broadcast %15 : vector<1x1x8xi32> to vector<1x8x8xi32>
        %29 = vector.broadcast %27 : vector<1x8x1xi32> to vector<1x8x8xi32>
        %30 = arith.cmpi sle, %28, %29 : vector<1x8x8xi32>
        %cst_6 = arith.constant 0.000000e+00 : f32
        %31 = vector.shape_cast %19 : vector<1x1x8xf32> to vector<1x1x8xf32>
        %32 = vector.broadcast %31 : vector<1x1x8xf32> to vector<1x8x8xf32>
        %33 = vector.broadcast %cst_6 : f32 to vector<1x8x8xf32>
        %34 = arith.select %30, %32, %33 : vector<1x8x8xi1>, vector<1x8x8xf32>
        %c0 = arith.constant 0 : index
        %c0_7 = arith.constant 0 : index
        %c0_8 = arith.constant 0 : index
        %35 = vector.load %arg4[%c0, %c0_7, %c0_8] : memref<1x8x8xf32, #tpu.memory_space<vmem>>, vector<1x8x8xf32>
        tpu.vector_store %arg4[%c0, %c0_7, %c0_8], %34 {strides = array<i32>} : memref<1x8x8xf32, #tpu.memory_space<vmem>>, vector<1x8x8xf32>,
      } else {
      }
    } else {
    }
    return
  }
  func.func @transform_0(%arg0: i32, %arg1: i32, %arg2: i32) -> i32 {
    %c0_i32 = arith.constant 0 : i32
    %c0_i32_0 = arith.constant 0 : i32
    return %c0_i32 : i32
  }
  func.func @transform_1(%arg0: i32, %arg1: i32, %arg2: i32) -> (i32, i32, i32) {
    %c0_i32 = arith.constant 0 : i32
    return %arg1, %arg0, %arg2 : i32, i32, i32
  }
}

</mosaic_0001>

<bundles_post_ra>
// kernel: tpu_custom_call.1
= control target key start
LH: loop header
LB: loop body
LE: loop exit
PB: predicated region body
PF: predicated region fallthrough
CT: control target
= control target key end

     0   :  { %6 = vsyncpa [#allocation4], 0  ;;  %s545_s0 = inlined_call_operand.hbm [shape: f32[4], index: 0, kind: input, shape index: {}]   ;;  %s546_s1 = inlined_call_operand.hbm [shape: f32[4,8,8], index: 1, kind: output, shape index: {}]  }
   0x1   :  { %7 = vsyncpa [#allocation3], 0 }
   0x2   :  { %9 = vsyncpa [#allocation3 + $0x1], 0  ;;  %s441_s6 = smov 0   ;;  %s443_s7 = smov 0  }
   0x3   :  { %s445_s8 = smov 0   ;;  %s447_s9 = smov 0  }
   0x4   :  { %s449_s10 = smov 0   ;;  %s451_s11 = smov 0  }
   0x5 LB: > { %s259_s12 = sadd.s32 4294967295, %s427_s11   ;;  %s260_s13 = sadd.s32 4294967294, %s427_s11   ;;  %s427_s11 = sphi %s451_s11, %s15_s11   ;;  %s423_s10 = sphi %s449_s10, %s553_s10   ;;  %s419_s9 = sphi %s447_s9, %s552_s9   ;;  %s415_s8 = sphi %s445_s8, %s551_s8   ;;  %s411_s7 = sphi %s443_s7, %s550_s7   ;;  %s407_s6 = sphi %s441_s6, %s549_s6  }
   0x6   : > { %s30_s14 = sadd.s32 1, %s423_s10  ;;  %s66_s15 = sadd.s32 1, %s415_s8 }
   0x7   : > { %p32_p0 = scmp.ge.s32.totalorder %s30_s14, 4  ;;  %p76_p1 = scmp.ne.s32.totalorder %s415_s8, %s411_s7 }
   0x8   : > { %p77_p2 = scmp.eq.s32.totalorder %s259_s12, 3  ;;  %p82_p3 = scmp.ne.s32.totalorder %s411_s7, %s407_s6 }
   0x9   : > { %s555_s14 = smov (%p32_p0, %s30_s14), 0  ;;  %p83_p5 = scmp.eq.s32.totalorder %s260_s13, 3 }
   0xa   : > { %p481_p4 = por %p77_p2, %p76_p1  ;;  %s59_s17 = ssub.s32 %s423_s10, %s555_s14 }
   0xb   : > { %p261_p6 = scmp.ge.s32.totalorder %s427_s11, 1  ;;  %p64_p7 = scmp.eq.s32.totalorder %s59_s17, 0 }
   0xc   : > { %p488_p8 = por %p83_p5, %p82_p3  ;;  %p90_p9 = scmp.lt.s32.totalorder %s427_s11, 5 }
   0xd   : > { %s494_s19 = scalar_select %p64_p7, %s415_s8, %s66_s15  }
   0xe   : > { %p91_p10 = pnand %p261_p6, %p90_p9  ;;  %p284_p11 = scmp.eq.s32.totalorder %s259_s12, 0 }
   0xf   : > { %s429_s20 = smov [#allocation2]  }
  0x10   : > { %p276_p12 = pneg %p91_p10  ;;  %114 = sbr.rel (%p91_p10) target bundleno = 50 (0x32), region = 24 }
  0x12   : > { %p277_p13 = pnand %p284_p11, %p276_p12 }
  0x14   : > { %279 = dma.hbm_to_smem (!%p277_p13), %s545_s0, 16, %s429_s20, [#allocation4]  }
  0x15   : > { %398 = dma.done.wait (%p284_p11), [#allocation4], 16  }
  0x16   : > { %400 = vsyncadd (%p284_p11), [#allocation4], 4294967280 }
  0x17   : > { %120 = sfence }
  0x18   : > { %s127_s23 = sand.u32 1, %s411_s7   ;;  %s130_s24 = sld [smem:[#allocation2 + %s419_s9]]  ;;  %v146_v0 = vlaneseq  ;;  %vm169_vm1 = vcmask 64512  }
  0x19   : > { %s265_s25 = sshll.u32 %s127_s23, 3  ;;  %s267_s29 = sshll.u32 %s419_s9, 7 }
  0x1a   : > { %v147_v1 = vand.u32 127, %v146_v0  ;;  %v164_v2 = vshrl.u32 %v146_v0, 7  ;;  %s129_s27 = scalar_lea.vmem [#allocation5], %s265_s25  ;;  %s185_s3 = scalar_lea.hbm %s546_s1, %s267_s29 }
  0x1b   : > { %s187_s28 = sshll.u32 %s129_s27, 4  ;;  %s172_s4 = scalar_lea.sflag [#allocation3], %s127_s23  ;;  %s502_s28 = int_to_ptr.vmem [resolvable:$true] %s187_s28 }
  0x1c   : > { %v151_v3 = vcvt.s32.f32 %v147_v1  ;;  %vm167_vm0 = vcmp.le.s32.totalorder %v147_v1, %v164_v2  ;;  %s347_s5 = scalar_lea.vmem %s502_s28, 128  ;;  %s430_s9 = smov [#allocation5]  }
  0x1d   : > { %p348_p0 = scmp.ne.s32.totalorder %s502_s28, %s347_s5  ;;  %s351_s12 = sshll.u32 %s430_s9, 4  ;;  %s352_s12 = int_to_ptr.vmem [resolvable:$false] %s351_s12 }
  0x1e   : > { %s150_s26 = ssub.f32 0.0, %s130_s24  ;;  %s353_s13 = scalar_lea.vmem %s352_s12, 256 }
  0x1f   : > { %p349_p1 = pnand %p348_p0, %p481_p4  ;;  %p354_p3 = scmp.lt.s32.totalorder %s502_s28, %s352_s12 }
  0x20   : > { %v152_v4 = vstv %s150_s26  ;;  %p355_p5 = scmp.lt.s32.totalorder %s353_s13, %s347_s5 }
  0x21   : > { %v153_v5 = vmul.f32 %v152_v4, %v151_v3  ;;  %p350_p2 = pneg %p349_p1 }
  0x22   : > { %p356_p6 = por %p355_p5, %p354_p3 }
  0x23   : > { %v168_v6 = vsel %vm167_vm0, %v153_v5, 0.0 }
  0x24   : > { %170 = vst.msk [vmem:[%s129_s27] sm:$0xff] %vm169_vm1, %v168_v6  ;;  %p357_p7 = pnand %p356_p6, %p350_p2 }
  0x26   : > { %360 = shalt.err (!%p357_p7)
}
  0x27   : > { %s361_s15 = scalar_lea.hbm %s185_s3, 128  ;;  %s365_s21 = scalar_lea.hbm %s546_s1, 512 }
  0x28   : > { %p362_p9 = scmp.ne.s32.totalorder %s185_s3, %s361_s15  ;;  %p366_p12 = scmp.lt.s32.totalorder %s185_s3, %s546_s1 }
  0x29   : > { %p367_p13 = scmp.lt.s32.totalorder %s365_s21, %s361_s15 }
  0x2a   : > { %p363_p10 = pnand %p362_p9, %p481_p4 }
  0x2b   : > { %p368_p0 = por %p367_p13, %p366_p12 }
  0x2c   : > { %p364_p11 = pneg %p363_p10 }
  0x2e   : > { %p369_p1 = pnand %p368_p0, %p364_p11 }
  0x30   : > { %372 = shalt.err (!%p369_p1)
}
  0x31   : > { %274 = dma.vmem_to_hbm [thread:$0]  (%p481_p4), %s502_s28, 128, %s185_s3, %s172_s4  }
  0x32 PF: > { %p286_p2 = scmp.ge.s32.totalorder %s427_s11, 2  ;;  %s199_s24 = sand.u32 1, %s407_s6  }
  0x33   : > { %s200_s25 = scalar_lea.sflag [#allocation3], %s199_s24 }
  0x34   : > { %p281_p3 = pnand %p286_p2, %p488_p8 }
  0x36   : > { %p282_p5 = pneg %p281_p3 }
  0x38   : > { %402 = dma.done.wait (%p282_p5), %s200_s25, 128  }
  0x39   : > { %404 = vsyncadd (%p282_p5), %s200_s25, 4294967168  ;;  %s15_s11 = sadd.s32 1, %s427_s11   ;;  %s549_s6 = smov %s411_s7 }
  0x3a   : > { %p12_p6 = scmp.ge.s32.totalorder %s15_s11, 6   ;;  %s550_s7 = smov %s415_s8 }
  0x3b   : > { %s551_s8 = smov %s494_s19  ;;  %s552_s9 = smov %s423_s10 }
  0x3c   : > { %s553_s10 = smov %s555_s14  ;;  %14 = sbr.rel (!%p12_p6) target bundleno = 5 (0x5), region = 77 }
  0x41   :  { %205 = vsyncpa [#allocation3], 1 }
  0x42   :  { %207 = vsyncpa [#allocation3 + $0x1], 1 }
  0x43   :  { %208 = vsyncpa [#allocation4], 1 }
  0x44   :  { %210 = vsyncpa [#allocation4 + $0x1], 1 }

</bundles_post_ra>
